<compile_context>
chip_gen: v7x
topology: tpu7x:2x2x1
jax: 0.10.0
libtpu: 0.0.40
codegen_flags: <defaults>
</compile_context>

<pallas_src>
import functools
from typing import NamedTuple

import jax
import jax.numpy as jnp
from jax import lax
from jax.experimental import pallas as pl
from jax.experimental.pallas import tpu as pltpu


def _relu6(x):
    return jnp.minimum(jnp.maximum(x, 0.0), 6.0)


def _round_up(x, m):
    return (x + m - 1) // m * m


class FFMeta(NamedTuple):
    dim_in: int
    dim_out: int
    n_layers: int


# --------------------------------------------------------------------------
# Kernels
# --------------------------------------------------------------------------
def feedforward_kernel(x_ref, w0_ref, b0_ref, wh_ref, bh_ref, wo_ref, bo_ref,
                       o_ref):
    """Fused MLP forward for one batch tile.

    x_ref : (TB, dim_in)
    w0_ref: (dim_in, Wp)          b0_ref: (1, Wp)      [f32]
    wh_ref: (n_layers, Wp, Wp)    bh_ref: (n_layers, 1, Wp)
    wo_ref: (Wp, Dp)              bo_ref: (1, Dp)
    o_ref : (TB, Dp)
    Hidden width Wp is lane-padded to x128; Dp is padded only when wide.
    """
    w_dtype = w0_ref.dtype  # matmul input dtype (f32 or bf16); acc always f32

    h = jnp.dot(x_ref[...].astype(w_dtype), w0_ref[...],
                preferred_element_type=jnp.float32) + b0_ref[...]

    n_layers = wh_ref.shape[0]

    def layer(i, h):
        z = jnp.dot(h.astype(w_dtype), wh_ref[i],
                    preferred_element_type=jnp.float32) + bh_ref[i]
        return _relu6(z)

    # Visible loop keeps vreg live ranges tight; full unroll for short stacks.
    h = lax.fori_loop(0, n_layers, layer, h,
                      unroll=True if n_layers <= 8 else 2)

    out = jnp.dot(h.astype(w_dtype), wo_ref[...],
                  preferred_element_type=jnp.float32) + bo_ref[...]
    o_ref[...] = out.astype(o_ref.dtype)


def feedforward_kernel_nohidden(x_ref, w0_ref, b0_ref, wo_ref, bo_ref, o_ref):
    """n_layers == 0 variant: Linear -> Linear, no activation."""
    w_dtype = w0_ref.dtype
    h = jnp.dot(x_ref[...].astype(w_dtype), w0_ref[...],
                preferred_element_type=jnp.float32) + b0_ref[...]
    out = jnp.dot(h.astype(w_dtype), wo_ref[...],
                  preferred_element_type=jnp.float32) + bo_ref[...]
    o_ref[...] = out.astype(o_ref.dtype)


# --------------------------------------------------------------------------
# Parameter construction / one-time preparation
# --------------------------------------------------------------------------
def make_params(key, n_layers, layer_width, dim_in, dim_added,
                dtype=jnp.float32):
    """Deterministic synthetic parameters (PyTorch-style uniform fan-in init)."""
    dim_out = dim_in + dim_added
    keys = jax.random.split(key, 2 * (n_layers + 2))

    def lin(kw, kb, fan_in, fan_out):
        bound = 1.0 / jnp.sqrt(float(fan_in))
        w = jax.random.uniform(kw, (fan_in, fan_out), dtype, -bound, bound)
        b = jax.random.uniform(kb, (1, fan_out), dtype, -bound, bound)
        return w, b

    w0, b0 = lin(keys[0], keys[1], dim_in, layer_width)
    wh_list, bh_list = [], []
    for i in range(n_layers):
        w, b = lin(keys[2 + 2 * i], keys[3 + 2 * i], layer_width, layer_width)
        wh_list.append(w)
        bh_list.append(b)
    if n_layers > 0:
        wh = jnp.stack(wh_list, axis=0)                  # (n_layers, W, W)
        bh = jnp.stack(bh_list, axis=0)                  # (n_layers, 1, W)
    else:
        wh = jnp.zeros((0, layer_width, layer_width), dtype)
        bh = jnp.zeros((0, 1, layer_width), dtype)
    wo, bo = lin(keys[-2], keys[-1], layer_width, dim_out)
    return dict(w0=w0, b0=b0, wh=wh, bh=bh, wo=wo, bo=bo)


def prepare_params(params, *, compute_dtype=jnp.float32,
                   pad_output_lanes=None):
    """One-time padding/casting of the parameters (hoisted out of the call path).

    Zero padding is numerically exact: padded hidden features stay 0 through
    every Linear + ReLU6, and padded output columns are sliced off outside
    the kernel.
    """
    w0 = jnp.asarray(params["w0"])
    b0 = jnp.asarray(params["b0"])
    wh = jnp.asarray(params["wh"])
    bh = jnp.asarray(params["bh"])
    wo = jnp.asarray(params["wo"])
    bo = jnp.asarray(params["bo"])

    dim_in, W = w0.shape
    n_layers = wh.shape[0]
    dim_out = wo.shape[1]

    Wp = _round_up(W, 128)
    if pad_output_lanes is None:
        # Lane-dense output is a win for wide outputs; for tiny dim_out the
        # extra HBM writeback outweighs the unmasked-store benefit.
        pad_output_lanes = dim_out > 64
    Dp = _round_up(dim_out, 128) if pad_output_lanes else dim_out

    wdt = compute_dtype  # matmul dtype (bf16 halves weight HBM/VMEM traffic)
    prepped = dict(
        w0=jnp.pad(w0.astype(wdt), ((0, 0), (0, Wp - W))),
        b0=jnp.pad(b0.astype(jnp.float32), ((0, 0), (0, Wp - W))),
        wh=jnp.pad(wh.astype(wdt), ((0, 0), (0, Wp - W), (0, Wp - W))),
        bh=jnp.pad(bh.astype(jnp.float32), ((0, 0), (0, 0), (0, Wp - W))),
        wo=jnp.pad(wo.astype(wdt), ((0, Wp - W), (0, Dp - dim_out))),
        bo=jnp.pad(bo.astype(jnp.float32), ((0, 0), (0, Dp - dim_out))),
    )
    meta = FFMeta(dim_in=int(dim_in), dim_out=int(dim_out),
                  n_layers=int(n_layers))
    return prepped, meta


# --------------------------------------------------------------------------
# Wrapper
# --------------------------------------------------------------------------
def _device_kind():
    try:
        return jax.devices()[0].device_kind.lower()
    except Exception:
        return ""


def _vmem_capacity_bytes(kind):
    try:
        cap = getattr(pltpu.get_tpu_info(), "vmem_capacity_bytes", None)
        if cap:
            return int(cap)
    except Exception:
        pass
    # v7x has 64 MiB/TC; v5e/v6e have 128 MiB.  Default conservatively.
    return (64 if "v7" in kind else 128) * 1024 * 1024


@functools.partial(jax.jit, static_argnames=("meta", "batch_tile"))
def feedforward(x, prepped, *, meta, batch_tile=None):
    B, dim_in = x.shape
    assert dim_in == meta.dim_in, "input feature dim mismatch"

    n_layers = meta.n_layers
    Wp = prepped["w0"].shape[1]
    Dp = prepped["wo"].shape[1]
    out_dtype = x.dtype

    x_bytes = jnp.dtype(x.dtype).itemsize
    out_bytes = jnp.dtype(out_dtype).itemsize
    w_itemsize = jnp.dtype(prepped["w0"].dtype).itemsize

    # ---- VMEM footprint of the resident (single-buffered) weights ----------
    w_bytes = ((dim_in * Wp + n_layers * Wp * Wp + Wp * Dp) * w_itemsize
               + (Wp + n_layers * Wp + Dp) * 4)           # biases (f32)

    kind = _device_kind()
    multi_tc = ("v7" in kind) or ("v4" in kind) or ("v5p" in kind)
    cap = _vmem_capacity_bytes(kind)

    # TODO(synk): if w_bytes alone exceeds ~60% of VMEM (very deep/wide stacks
    # on v7x's 64 MiB), stream wh one layer at a time with manual
    # double-buffered make_async_copy instead of keeping the stack resident.

    # Per-batch-row VMEM: double-buffered x/out tiles + f32 activation staging.
    per_row = (2 * dim_in * x_bytes
               + 2 * Dp * out_bytes
               + 3 * Wp * 4 + Dp * 4)
    budget = max(int(0.75 * cap) - w_bytes, per_row * 8)
    bt_cap = max(8, min(1024, (budget // per_row) // 8 * 8))

    # ---- Batch tiling (generation-aware) ------------------------------------
    if batch_tile is not None:
        bt = max(8, _round_up(int(batch_tile), 8))
    elif B <= 8:
        bt = _round_up(max(B, 1), 8)
    elif multi_tc:
        # 2 TensorCores: split the batch so both cores get work; cap the tile
        # for wide hidden layers so activation staging fits v7x's VMEM.
        hard_cap = 256 if Wp >= 1024 else 512
        bt = min(bt_cap, hard_cap, _round_up(pl.cdiv(B, 2), 8))
    else:
        # Single TensorCore (v5e/v6e): the grid is a serial loop, so use one
        # large tile and only split when the batch exceeds the VMEM budget.
        bt = min(bt_cap, 1024, _round_up(B, 8))
    bt = max(8, bt)

    B_pad = _round_up(B, bt)
    grid = (B_pad // bt,)

    xf = x
    if B_pad != B:
        xf = jnp.pad(xf, ((0, B_pad - B), (0, 0)))

    # ---- Explicit VMEM limit based on the actual footprint ------------------
    footprint = w_bytes + bt * per_row
    vmem_limit = int(min(0.9 * cap,
                         max(32 * 1024 * 1024, 1.4 * footprint + (4 << 20))))

    flops = int(2 * B_pad * (dim_in * Wp + n_layers * Wp * Wp + Wp * Dp))
    bytes_accessed = int(B_pad * dim_in * x_bytes + w_bytes
                         + B_pad * Dp * out_bytes)

    resident = pl.Buffered(1)  # constant-index weights: single VMEM buffer

    in_specs = [
        pl.BlockSpec((bt, dim_in), lambda i: (i, 0)),                      # x
        pl.BlockSpec((dim_in, Wp), lambda i: (0, 0), pipeline_mode=resident),
        pl.BlockSpec((1, Wp), lambda i: (0, 0), pipeline_mode=resident),
    ]
    operands = [xf, prepped["w0"], prepped["b0"]]
    if n_layers > 0:
        in_specs += [
            pl.BlockSpec((n_layers, Wp, Wp), lambda i: (0, 0, 0),
                         pipeline_mode=resident),
            pl.BlockSpec((n_layers, 1, Wp), lambda i: (0, 0, 0),
                         pipeline_mode=resident),
        ]
        operands += [prepped["wh"], prepped["bh"]]
        kernel = feedforward_kernel
    else:
        kernel = feedforward_kernel_nohidden
    in_specs += [
        pl.BlockSpec((Wp, Dp), lambda i: (0, 0), pipeline_mode=resident),
        pl.BlockSpec((1, Dp), lambda i: (0, 0), pipeline_mode=resident),
    ]
    operands += [prepped["wo"], prepped["bo"]]

    grid_spec = pl.GridSpec(
        grid=grid,
        in_specs=in_specs,
        out_specs=pl.BlockSpec((bt, Dp), lambda i: (i, 0)),
    )

    out_padded = pl.pallas_call(
        kernel,
        out_shape=jax.ShapeDtypeStruct((B_pad, Dp), out_dtype),
        grid_spec=grid_spec,
        cost_estimate=pl.CostEstimate(
            flops=flops, transcendentals=0, bytes_accessed=bytes_accessed),
        compiler_params=pltpu.CompilerParams(
            dimension_semantics=("parallel",),
            vmem_limit_bytes=vmem_limit),
    )(*operands)

    return out_padded[:B, :meta.dim_out]


# --------------------------------------------------------------------------
# Pure-JAX reference (mirrors the PyTorch forward exactly)
# --------------------------------------------------------------------------
def feedforward_ref(x, params):
    h = x @ params["w0"] + params["b0"]
    for i in range(params["wh"].shape[0]):
        h = h @ params["wh"][i] + params["bh"][i]
        h = _relu6(h)
    return h @ params["wo"] + params["bo"]


if __name__ == "__main__":
    # Small shapes consistent with the module: vector input of length dim_in.
    n_layers = 2
    layer_width = 32
    dim_in = 4
    dim_added = 4
    batch = 16

    key = jax.random.PRNGKey(0)
    kx, kp = jax.random.split(key)
    x = jax.random.normal(kx, (batch, dim_in), dtype=jnp.float32)
    params = make_params(kp, n_layers, layer_width, dim_in, dim_added)

    # One-time padding/casting of the parameters (hoisted out of the per-call
    # path); the prepared pytree is reused across every feedforward() call.
    prepped, meta = prepare_params(params)

    out = feedforward(x, prepped, meta=meta)
    out = jax.block_until_ready(out)

    ref = feedforward_ref(x, params)
    assert out.shape == (batch, dim_in + dim_added)
    assert jnp.allclose(out, ref, atol=1e-5, rtol=1e-5), "mismatch vs reference"

    print("KERNEL_OK")
</pallas_src>

<mosaic_0001>
module attributes {stable_mosaic.version = 11 : i64} {
  func.func @feedforward_kernel(%arg0: i32, %arg1: memref<16x4xf32, #tpu.memory_space<vmem>>, %arg2: memref<4x128xf32, #tpu.memory_space<vmem>>, %arg3: memref<1x128xf32, #tpu.memory_space<vmem>>, %arg4: memref<2x128x128xf32, #tpu.memory_space<vmem>>, %arg5: memref<2x1x128xf32, #tpu.memory_space<vmem>>, %arg6: memref<128x8xf32, #tpu.memory_space<vmem>>, %arg7: memref<1x8xf32, #tpu.memory_space<vmem>>, %arg8: memref<16x8xf32, #tpu.memory_space<vmem>>) attributes {dimension_semantics = [#tpu.dimension_semantics<parallel>], iteration_bounds = array<i64: 1>, scalar_prefetch = 0 : i64, scratch_operands = 0 : i64, tpu.core_type = #tpu.core_type<tc>, window_params = [{transform_indices = @transform_0, window_bounds = array<i64: 16, 4>}, {pipeline_mode = #tpu.pipeline_mode<synchronous>, transform_indices = @transform_1, window_bounds = array<i64: 4, 128>}, {pipeline_mode = #tpu.pipeline_mode<synchronous>, transform_indices = @transform_2, window_bounds = array<i64: 1, 128>}, {pipeline_mode = #tpu.pipeline_mode<synchronous>, transform_indices = @transform_3, window_bounds = array<i64: 2, 128, 128>}, {pipeline_mode = #tpu.pipeline_mode<synchronous>, transform_indices = @transform_4, window_bounds = array<i64: 2, 1, 128>}, {pipeline_mode = #tpu.pipeline_mode<synchronous>, transform_indices = @transform_5, window_bounds = array<i64: 128, 8>}, {pipeline_mode = #tpu.pipeline_mode<synchronous>, transform_indices = @transform_6, window_bounds = array<i64: 1, 8>}, {transform_indices = @transform_7, window_bounds = array<i64: 16, 8>}]} {
    %c0 = arith.constant 0 : index
    %c0_0 = arith.constant 0 : index
    %0 = vector.load %arg1[%c0, %c0_0] : memref<16x4xf32, #tpu.memory_space<vmem>>, vector<16x4xf32>
    %c0_1 = arith.constant 0 : index
    %c0_2 = arith.constant 0 : index
    %1 = vector.load %arg2[%c0_1, %c0_2] : memref<4x128xf32, #tpu.memory_space<vmem>>, vector<4x128xf32>
    %cst = arith.constant dense<0.000000e+00> : vector<16x128xf32>
    %2 = tpu.matmul %0, %1, %cst {dimension_numbers = #tpu.dot_dimension_numbers<[1], [0], [0], [1], [0, 0, 1, 1], [], []>} : vector<16x4xf32>, vector<4x128xf32>, vector<16x128xf32> -> vector<16x128xf32>
    %c0_3 = arith.constant 0 : index
    %c0_4 = arith.constant 0 : index
    %3 = vector.load %arg3[%c0_3, %c0_4] : memref<1x128xf32, #tpu.memory_space<vmem>>, vector<1x128xf32>
    %4 = vector.broadcast %3 : vector<1x128xf32> to vector<16x128xf32>
    %5 = arith.addf %2, %4 : vector<16x128xf32>
    %c0_i32 = arith.constant 0 : i32
    %6 = arith.index_cast %c0_i32 : i32 to index
    %c0_5 = arith.constant 0 : index
    %c0_6 = arith.constant 0 : index
    %7 = vector.load %arg4[%6, %c0_5, %c0_6] : memref<2x128x128xf32, #tpu.memory_space<vmem>>, vector<1x128x128xf32>
    %8 = vector.shape_cast %7 : vector<1x128x128xf32> to vector<128x128xf32>
    %cst_7 = arith.constant dense<0.000000e+00> : vector<16x128xf32>
    %9 = tpu.matmul %5, %8, %cst_7 {dimension_numbers = #tpu.dot_dimension_numbers<[1], [0], [0], [1], [0, 0, 1, 1], [], []>} : vector<16x128xf32>, vector<128x128xf32>, vector<16x128xf32> -> vector<16x128xf32>
    %10 = arith.index_cast %c0_i32 : i32 to index
    %c0_8 = arith.constant 0 : index
    %c0_9 = arith.constant 0 : index
    %11 = vector.load %arg5[%10, %c0_8, %c0_9] : memref<2x1x128xf32, #tpu.memory_space<vmem>>, vector<1x1x128xf32>
    %12 = vector.shape_cast %11 : vector<1x1x128xf32> to vector<1x128xf32>
    %13 = vector.broadcast %12 : vector<1x128xf32> to vector<16x128xf32>
    %14 = arith.addf %9, %13 : vector<16x128xf32>
    %cst_10 = arith.constant 0.000000e+00 : f32
    %15 = vector.broadcast %cst_10 : f32 to vector<16x128xf32>
    %16 = arith.maximumf %14, %15 : vector<16x128xf32>
    %cst_11 = arith.constant 6.000000e+00 : f32
    %17 = vector.broadcast %cst_11 : f32 to vector<16x128xf32>
    %18 = arith.minimumf %16, %17 : vector<16x128xf32>
    %c1_i32 = arith.constant 1 : i32
    %19 = arith.index_cast %c1_i32 : i32 to index
    %c0_12 = arith.constant 0 : index
    %c0_13 = arith.constant 0 : index
    %20 = vector.load %arg4[%19, %c0_12, %c0_13] : memref<2x128x128xf32, #tpu.memory_space<vmem>>, vector<1x128x128xf32>
    %21 = vector.shape_cast %20 : vector<1x128x128xf32> to vector<128x128xf32>
    %cst_14 = arith.constant dense<0.000000e+00> : vector<16x128xf32>
    %22 = tpu.matmul %18, %21, %cst_14 {dimension_numbers = #tpu.dot_dimension_numbers<[1], [0], [0], [1], [0, 0, 1, 1], [], []>} : vector<16x128xf32>, vector<128x128xf32>, vector<16x128xf32> -> vector<16x128xf32>
    %23 = arith.index_cast %c1_i32 : i32 to index
    %c0_15 = arith.constant 0 : index
    %c0_16 = arith.constant 0 : index
    %24 = vector.load %arg5[%23, %c0_15, %c0_16] : memref<2x1x128xf32, #tpu.memory_space<vmem>>, vector<1x1x128xf32>
    %25 = vector.shape_cast %24 : vector<1x1x128xf32> to vector<1x128xf32>
    %26 = vector.broadcast %25 : vector<1x128xf32> to vector<16x128xf32>
    %27 = arith.addf %22, %26 : vector<16x128xf32>
    %cst_17 = arith.constant 0.000000e+00 : f32
    %28 = vector.broadcast %cst_17 : f32 to vector<16x128xf32>
    %29 = arith.maximumf %27, %28 : vector<16x128xf32>
    %cst_18 = arith.constant 6.000000e+00 : f32
    %30 = vector.broadcast %cst_18 : f32 to vector<16x128xf32>
    %31 = arith.minimumf %29, %30 : vector<16x128xf32>
    %c2_i32 = arith.constant 2 : i32
    %c0_19 = arith.constant 0 : index
    %c0_20 = arith.constant 0 : index
    %32 = vector.load %arg6[%c0_19, %c0_20] : memref<128x8xf32, #tpu.memory_space<vmem>>, vector<128x8xf32>
    %cst_21 = arith.constant dense<0.000000e+00> : vector<16x8xf32>
    %33 = tpu.matmul %31, %32, %cst_21 {dimension_numbers = #tpu.dot_dimension_numbers<[1], [0], [0], [1], [0, 0, 1, 1], [], []>} : vector<16x128xf32>, vector<128x8xf32>, vector<16x8xf32> -> vector<16x8xf32>
    %c0_22 = arith.constant 0 : index
    %c0_23 = arith.constant 0 : index
    %34 = vector.load %arg7[%c0_22, %c0_23] : memref<1x8xf32, #tpu.memory_space<vmem>>, vector<1x8xf32>
    %35 = vector.broadcast %34 : vector<1x8xf32> to vector<16x8xf32>
    %36 = arith.addf %33, %35 : vector<16x8xf32>
    %c0_24 = arith.constant 0 : index
    %c0_25 = arith.constant 0 : index
    %37 = vector.load %arg8[%c0_24, %c0_25] : memref<16x8xf32, #tpu.memory_space<vmem>>, vector<16x8xf32>
    tpu.vector_store %arg8[%c0_24, %c0_25], %36 {strides = array<i32>} : memref<16x8xf32, #tpu.memory_space<vmem>>, vector<16x8xf32>,
    return
  }
  func.func @transform_0(%arg0: i32) -> (i32, i32) {
    %c0_i32 = arith.constant 0 : i32
    %c0_i32_0 = arith.constant 0 : i32
    return %arg0, %c0_i32 : i32, i32
  }
  func.func @transform_1(%arg0: i32) -> (i32, i32) {
    %c0_i32 = arith.constant 0 : i32
    %c0_i32_0 = arith.constant 0 : i32
    %c0_i32_1 = arith.constant 0 : i32
    return %c0_i32, %c0_i32_0 : i32, i32
  }
  func.func @transform_2(%arg0: i32) -> (i32, i32) {
    %c0_i32 = arith.constant 0 : i32
    %c0_i32_0 = arith.constant 0 : i32
    %c0_i32_1 = arith.constant 0 : i32
    return %c0_i32, %c0_i32_0 : i32, i32
  }
  func.func @transform_3(%arg0: i32) -> (i32, i32, i32) {
    %c0_i32 = arith.constant 0 : i32
    %c0_i32_0 = arith.constant 0 : i32
    %c0_i32_1 = arith.constant 0 : i32
    %c0_i32_2 = arith.constant 0 : i32
    return %c0_i32, %c0_i32_0, %c0_i32_1 : i32, i32, i32
  }
  func.func @transform_4(%arg0: i32) -> (i32, i32, i32) {
    %c0_i32 = arith.constant 0 : i32
    %c0_i32_0 = arith.constant 0 : i32
    %c0_i32_1 = arith.constant 0 : i32
    %c0_i32_2 = arith.constant 0 : i32
    return %c0_i32, %c0_i32_0, %c0_i32_1 : i32, i32, i32
  }
  func.func @transform_5(%arg0: i32) -> (i32, i32) {
    %c0_i32 = arith.constant 0 : i32
    %c0_i32_0 = arith.constant 0 : i32
    %c0_i32_1 = arith.constant 0 : i32
    return %c0_i32, %c0_i32_0 : i32, i32
  }
  func.func @transform_6(%arg0: i32) -> (i32, i32) {
    %c0_i32 = arith.constant 0 : i32
    %c0_i32_0 = arith.constant 0 : i32
    %c0_i32_1 = arith.constant 0 : i32
    return %c0_i32, %c0_i32_0 : i32, i32
  }
  func.func @transform_7(%arg0: i32) -> (i32, i32) {
    %c0_i32 = arith.constant 0 : i32
    %c0_i32_0 = arith.constant 0 : i32
    return %arg0, %c0_i32 : i32, i32
  }
}

</mosaic_0001>

<bundles_post_ra>
// kernel: feedforward.1
= control target key start
LH: loop header
LB: loop body
LE: loop exit
PB: predicated region body
PF: predicated region fallthrough
CT: control target
= control target key end

     0   :  { %12 = vsyncpa [#allocation3], 0  ;;  %s746_s24 = smov [#allocation2]   ;;  %s876_s0 = inlined_call_operand.vmem [shape: f32[16,4], index: 0, kind: input, shape index: {}]   ;;  %s877_s1 = inlined_call_operand.vmem [shape: f32[4,128], index: 1, kind: input, shape index: {}]   ;;  %s878_s2 = inlined_call_operand.vmem [shape: f32[1,128], index: 2, kind: input, shape index: {}]   ;;  %s879_s3 = inlined_call_operand.hbm [shape: f32[2,128,128], index: 3, kind: input, shape index: {}]   ;;  %s880_s4 = inlined_call_operand.vmem [shape: f32[2,1,128], index: 4, kind: input, shape index: {}]   ;;  %s881_s5 = inlined_call_operand.vmem [shape: f32[128,8], index: 5, kind: input, shape index: {}]   ;;  %s882_s6 = inlined_call_operand.vmem [shape: f32[1,8], index: 6, kind: input, shape index: {}]   ;;  %s883_s7 = inlined_call_operand.vmem [shape: f32[16,8], index: 7, kind: output, shape index: {}]  }
   0x1   :  { %s24_s25 = sshll.u32 %s746_s24, 4  ;;  %s722_s28 = scalar_lea.hbm %s879_s3, 4096  ;;  %s25_s25 = int_to_ptr.vmem [resolvable:$true] %s24_s25 }
   0x2   :  { %p723_p0 = scmp.ne.s32.totalorder %s879_s3, %s722_s28  ;;  %p726_p1 = scmp.lt.u32.totalorder %s722_s28, %s879_s3 }
   0x4   :  { %p728_p2 = pnand %p726_p1, %p723_p0 }
   0x6   :  { %731 = shalt.err (!%p728_p2)
}
   0x7   :  { %s732_s10 = scalar_lea.vmem %s25_s25, 4096  ;;  %p737_p4 = scmp.lt.s32.totalorder %s25_s25, %s25_s25 }
   0x8   :  { %p733_p3 = scmp.ne.s32.totalorder %s25_s25, %s732_s10  ;;  %p738_p5 = scmp.lt.s32.totalorder %s732_s10, %s732_s10 }
   0xa   :  { %p739_p6 = por %p738_p5, %p737_p4 }
   0xc   :  { %p740_p7 = pnand %p739_p6, %p733_p3 }
   0xe   :  { %743 = shalt.err (!%p740_p7)
}
   0xf   :  { %s747_s11 = smov 128   ;;  %s748_s12 = smov 8  }
  0x10   :  { %30 = dma.hbm_to_vmem [thread:$0]  %s879_s3, 4096, %s25_s25, [#allocation3], %s747_s11, %s747_s11, %s748_s12  }
  0x11   :  { %744 = dma.done.wait [#allocation3], 4096  }
  0x12   :  { %745 = vsyncadd [#allocation3], 4294963200  ;;  %vm57_vm0 = vcmask 1043456   ;;  %vm50_vm1 = vcmask 31744   ;;  %v42_v0 = vld [vmem:[%s877_s1] sm:$0xf] }
  0x13   :  { %v40_v1 = vld [vmem:[%s876_s0] sm:$0xff]  ;;  %v41_v2 = vld [vmem:[%s876_s0 + $0x8] sm:$0xff]  ;;  %513 = vmatprep.subr.msk.mxu0 %vm57_vm0, %v42_v0  ;;  %v138_v5 = vld [vmem:[#allocation2 + $0x10] sm:$0xff]  ;;  %vm440_vm2 = vcmask 64512  }
  0x14   :  { %515 = vmatprep.mubr.msk.f32.mxu0 %vm50_vm1, %v40_v1  ;;  %v136_v3 = vld [vmem:[#allocation2] sm:$0xff]  ;;  %v137_v4 = vld [vmem:[#allocation2 + $0x8] sm:$0xff]  ;;  %514 = vmatpush3.msk.msra.mxu0 %vm57_vm0, %v42_v0  ;;  %v139_v7 = vld [vmem:[#allocation2 + $0x18] sm:$0xff] }
  0x15   :  { %v623_v6 = vpack.c.bf16 %v137_v4, %v136_v3  ;;  %516 = vmatmul.mubr.msk.f32.vlgmr.msra.gmra.mrb[0].mxu0 %vm50_vm1, %v41_v2  ;;  %v627_v8 = vpack.c.bf16 %v139_v7, %v138_v5  ;;  %v140_v9 = vld [vmem:[#allocation2 + $0x20] sm:$0xff]  ;;  %v141_v10 = vld [vmem:[#allocation2 + $0x28] sm:$0xff]  ;;  %v142_v12 = vld [vmem:[#allocation2 + $0x30] sm:$0xff] }
  0x16   :  { %v631_v11 = vpack.c.bf16 %v141_v10, %v140_v9  ;;  %v143_v13 = vld [vmem:[#allocation2 + $0x38] sm:$0xff]  ;;  %v144_v15 = vld [vmem:[#allocation2 + $0x40] sm:$0xff]  ;;  %v145_v16 = vld [vmem:[#allocation2 + $0x48] sm:$0xff] }
  0x17   :  { %624 = vmatprep.subr.bf16.mxu1 %v623_v6  ;;  %v635_v14 = vpack.c.bf16 %v143_v13, %v142_v12  ;;  %v639_v17 = vpack.c.bf16 %v145_v16, %v144_v15  ;;  %v146_v18 = vld [vmem:[#allocation2 + $0x50] sm:$0xff]  ;;  %v147_v19 = vld [vmem:[#allocation2 + $0x58] sm:$0xff]  ;;  %v148_v21 = vld [vmem:[#allocation2 + $0x60] sm:$0xff] }
  0x18   :  { %626 = vmatpush3.bf16.msra.mxu1 %v623_v6  ;;  %v643_v20 = vpack.c.bf16 %v147_v19, %v146_v18  ;;  %v149_v22 = vld [vmem:[#allocation2 + $0x68] sm:$0xff]  ;;  %v150_v24 = vld [vmem:[#allocation2 + $0x70] sm:$0xff]  ;;  %v151_v25 = vld [vmem:[#allocation2 + $0x78] sm:$0xff] }
  0x19   :  { %628 = vmatprep.subr.bf16.mxu1 %v627_v8  ;;  %v647_v23 = vpack.c.bf16 %v149_v22, %v148_v21  ;;  %v651_v26 = vpack.c.bf16 %v151_v25, %v150_v24  ;;  %v239_v27 = vld [vmem:[#allocation2 + $0x80] sm:$0xff]  ;;  %v240_v28 = vld [vmem:[#allocation2 + $0x88] sm:$0xff]  ;;  %v241_v29 = vld [vmem:[#allocation2 + $0x90] sm:$0xff] }
  0x1a   :  { %v655_v30 = vpack.c.bf16 %v240_v28, %v239_v27  ;;  %v242_v31 = vld [vmem:[#allocation2 + $0x98] sm:$0xff]  ;;  %v243_v33 = vld [vmem:[#allocation2 + $0xa0] sm:$0xff]  ;;  %v244_v34 = vld [vmem:[#allocation2 + $0xa8] sm:$0xff] }
  0x1b   :  { %v659_v32 = vpack.c.bf16 %v242_v31, %v241_v29  ;;  %v663_v35 = vpack.c.bf16 %v244_v34, %v243_v33  ;;  %v245_v36 = vld [vmem:[#allocation2 + $0xb0] sm:$0xff]  ;;  %v246_v37 = vld [vmem:[#allocation2 + $0xb8] sm:$0xff]  ;;  %v247_v39 = vld [vmem:[#allocation2 + $0xc0] sm:$0xff] }
  0x1c   :  { %630 = vmatpush3.bf16.msra.mxu1 %v627_v8  ;;  %656 = vmatprep.subr.bf16.mxu0 %v655_v30  ;;  %v667_v38 = vpack.c.bf16 %v246_v37, %v245_v36  ;;  %v248_v40 = vld [vmem:[#allocation2 + $0xc8] sm:$0xff]  ;;  %v249_v42 = vld [vmem:[#allocation2 + $0xd0] sm:$0xff]  ;;  %v250_v43 = vld [vmem:[#allocation2 + $0xd8] sm:$0xff] }
  0x1d   :  { %632 = vmatprep.subr.bf16.mxu1 %v631_v11  ;;  %658 = vmatpush3.bf16.msra.mxu0 %v655_v30  ;;  %v671_v41 = vpack.c.bf16 %v248_v40, %v247_v39  ;;  %v675_v44 = vpack.c.bf16 %v250_v43, %v249_v42  ;;  %v448_v45 = vld [vmem:[%s878_s2] ss:$0 sm:$0xff]  ;;  %v252_v51 = vld [vmem:[#allocation2 + $0xe8] sm:$0xff]  ;;  %v253_v53 = vld [vmem:[#allocation2 + $0xf0] sm:$0xff] }
  0x1e   :  { %660 = vmatprep.subr.bf16.mxu0 %v659_v32  ;;  %v251_v50 = vld [vmem:[#allocation2 + $0xe0] sm:$0xff]  ;;  %v254_v54 = vld [vmem:[#allocation2 + $0xf8] sm:$0xff]  ;;  %v343_v57 = vld [vmem:[%s881_s5 + $0x8] sm:$0xff] }
  0x1f   :  { %v679_v52 = vpack.c.bf16 %v252_v51, %v251_v50  ;;  %v683_v55 = vpack.c.bf16 %v254_v54, %v253_v53  ;;  %v342_v56 = vld [vmem:[%s881_s5] sm:$0xff]  ;;  %v344_v58 = vld [vmem:[%s881_s5 + $0x10] sm:$0xff]  ;;  %v345_v60 = vld [vmem:[%s881_s5 + $0x18] sm:$0xff] }
  0x20   :  { %634 = vmatpush3.bf16.msra.mxu1 %v631_v11  ;;  %v687_v59 = vpack.c.bf16 %v343_v57, %v342_v56  ;;  %v691_v61 = vpack.c.bf16 %v345_v60, %v344_v58  ;;  %v346_v62 = vld [vmem:[%s881_s5 + $0x20] sm:$0xff]  ;;  %v347_v63 = vld [vmem:[%s881_s5 + $0x28] sm:$0xff]  ;;  %v348_v1 = vld [vmem:[%s881_s5 + $0x30] sm:$0xff] }
  0x21   :  { %636 = vmatprep.subr.bf16.mxu1 %v635_v14  ;;  %662 = vmatpush3.bf16.msra.mxu0 %v659_v32  ;;  %v695_v0 = vpack.c.bf16 %v347_v63, %v346_v62  ;;  %v349_v2 = vld [vmem:[%s881_s5 + $0x38] sm:$0xff]  ;;  %v350_v4 = vld [vmem:[%s881_s5 + $0x40] sm:$0xff]  ;;  %v351_v5 = vld [vmem:[%s881_s5 + $0x48] sm:$0xff] }
  0x22   :  { %664 = vmatprep.subr.bf16.mxu0 %v663_v35  ;;  %v699_v3 = vpack.c.bf16 %v349_v2, %v348_v1  ;;  %v703_v6 = vpack.c.bf16 %v351_v5, %v350_v4  ;;  %v352_v7 = vld [vmem:[%s881_s5 + $0x50] sm:$0xff]  ;;  %v353_v8 = vld [vmem:[%s881_s5 + $0x58] sm:$0xff]  ;;  %v452_v10 = vld [vmem:[%s880_s4] ss:$0 sm:$0xff] }
  0x23   :  { %v707_v9 = vpack.c.bf16 %v353_v8, %v352_v7  ;;  %v354_v19 = vld [vmem:[%s881_s5 + $0x60] sm:$0xff]  ;;  %v356_v22 = vld [vmem:[%s881_s5 + $0x70] sm:$0xff] }
  0x24   :  { %638 = vmatpush3.bf16.msra.mxu1 %v635_v14  ;;  %v454_v25 = vld [vmem:[%s880_s4 + $0x1] ss:$0 sm:$0xff]  ;;  %v455_v34 = vld [vmem:[%s882_s6] ss:$0 sm:$0xff] }
  0x25   :  { %640 = vmatprep.subr.bf16.mxu1 %v639_v17  ;;  %666 = vmatpush3.bf16.msra.mxu0 %v663_v35 }
  0x26   :  { %668 = vmatprep.subr.bf16.mxu0 %v667_v38 }
  0x28   :  { %642 = vmatpush3.bf16.msra.mxu1 %v639_v17 }
  0x29   :  { %644 = vmatprep.subr.bf16.mxu1 %v643_v20  ;;  %670 = vmatpush3.bf16.msra.mxu0 %v667_v38 }
  0x2a   :  { %672 = vmatprep.subr.bf16.mxu0 %v671_v41 }
  0x2c   :  { %646 = vmatpush3.bf16.msra.mxu1 %v643_v20  ;;  %v355_v20 = vld [vmem:[%s881_s5 + $0x68] sm:$0xff] }
  0x2d   :  { %648 = vmatprep.subr.bf16.mxu1 %v647_v23  ;;  %674 = vmatpush3.bf16.msra.mxu0 %v671_v41  ;;  %v711_v21 = vpack.c.bf16 %v355_v20, %v354_v19 }
  0x2e   :  { %676 = vmatprep.subr.bf16.mxu0 %v675_v44 }
  0x30   :  { %650 = vmatpush3.bf16.msra.mxu1 %v647_v23  ;;  %v357_v23 = vld [vmem:[%s881_s5 + $0x78] sm:$0xff] }
  0x31   :  { %652 = vmatprep.subr.bf16.mxu1 %v651_v26  ;;  %678 = vmatpush3.bf16.msra.mxu0 %v675_v44  ;;  %v715_v24 = vpack.c.bf16 %v357_v23, %v356_v22 }
  0x32   :  { %680 = vmatprep.subr.bf16.mxu0 %v679_v52 }
  0x34   :  { %654 = vmatpush3.bf16.msra.mxu1 %v651_v26 }
  0x35   :  { %682 = vmatpush3.bf16.msra.mxu0 %v679_v52  ;;  %688 = vmatprep.subr.bf16.mxu1 %v687_v59 }
  0x36   :  { %684 = vmatprep.subr.bf16.mxu0 %v683_v55 }
  0x39   :  { %686 = vmatpush3.bf16.msra.mxu0 %v683_v55 }
  0xe8   :  { %v517_v46 = vpop.f32.mrb[0].mxu0 }
  0xe9   :  { %v127_v47 = vpop.f32.mrb[1].mxu0  ;;  %v133_v49 = vadd.f32 %v517_v46, %v448_v45 }
  0xea   :  { %v128_v48 = vadd.f32 %v448_v45, %v127_v47 }
  0xec   :  { %550 = vmatprep.mubr.f32.mxu1 %v128_v48 }
  0xed   :  { %551 = vmatmul.mubr.f32.vlgmr.msra.gmra.mrb[0].mxu1 %v133_v49 }
  0xee   :  { %690 = vmatpush3.bf16.msra.mxu1 %v687_v59 }
  0xef   :  { %692 = vmatprep.subr.bf16.mxu1 %v691_v61 }
  0xf2   :  { %694 = vmatpush3.bf16.msra.mxu1 %v691_v61 }
  0xf3   :  { %696 = vmatprep.subr.bf16.mxu1 %v695_v0 }
  0xf6   :  { %698 = vmatpush3.bf16.msra.mxu1 %v695_v0 }
  0xf7   :  { %700 = vmatprep.subr.bf16.mxu1 %v699_v3 }
  0xfa   :  { %702 = vmatpush3.bf16.msra.mxu1 %v699_v3 }
  0xfb   :  { %704 = vmatprep.subr.bf16.mxu1 %v703_v6 }
  0xfe   :  { %706 = vmatpush3.bf16.msra.mxu1 %v703_v6 }
  0xff   :  { %708 = vmatprep.subr.bf16.mxu1 %v707_v9 }
 0x102   :  { %710 = vmatpush3.bf16.msra.mxu1 %v707_v9 }
 0x103   :  { %712 = vmatprep.subr.bf16.mxu1 %v711_v21 }
 0x106   :  { %714 = vmatpush3.bf16.msra.mxu1 %v711_v21 }
 0x107   :  { %716 = vmatprep.subr.bf16.mxu1 %v715_v24 }
 0x10a   :  { %718 = vmatpush3.bf16.msra.mxu1 %v715_v24 }
 0x1c0   :  { %v552_v11 = vpop.f32.mrb[0].mxu1 }
 0x1c1   :  { %v231_v12 = vadd.f32 %v552_v11, %v452_v10  ;;  %v225_v13 = vpop.f32.mrb[1].mxu1 }
 0x1c2   :  { %v226_v14 = vadd.f32 %v452_v10, %v225_v13 }
 0x1c3   :  { %v235_v15 = vmax.f32 %v231_v12, 0.0 }
 0x1c4   :  { %v234_v16 = vmax.f32 %v226_v14, 0.0 }
 0x1c5   :  { %v237_v18 = vmin.f32 %v235_v15, 6.0 }
 0x1c6   :  { %v236_v17 = vmin.f32 %v234_v16, 6.0 }
 0x1c8   :  { %585 = vmatprep.mubr.f32.mxu0 %v236_v17 }
 0x1c9   :  { %586 = vmatmul.mubr.f32.vlgmr.msra.gmra.mrb[2].mxu0 %v237_v18 }
 0x29c   :  { %v587_v26 = vpop.f32.mrb[2].mxu0 }
 0x29d   :  { %v335_v27 = vadd.f32 %v587_v26, %v454_v25  ;;  %v329_v28 = vpop.f32.mrb[3].mxu0 }
 0x29e   :  { %v330_v29 = vadd.f32 %v454_v25, %v329_v28 }
 0x29f   :  { %v339_v30 = vmax.f32 %v335_v27, 0.0 }
 0x2a0   :  { %v338_v31 = vmax.f32 %v330_v29, 0.0 }
 0x2a1   :  { %v341_v33 = vmin.f32 %v339_v30, 6.0 }
 0x2a2   :  { %v340_v32 = vmin.f32 %v338_v31, 6.0 }
 0x2a4   :  { %620 = vmatprep.mubr.f32.mxu1 %v340_v32 }
 0x2a5   :  { %621 = vmatmul.mubr.f32.vlgmr.msra.gmra.mrb[2].mxu1 %v341_v33 }
 0x378   :  { %v622_v35 = vpop.f32.mrb[2].mxu1 }
 0x379   :  { %v437_v36 = vadd.f32 %v622_v35, %v455_v34  ;;  %v431_v37 = vpop.f32.mrb[3].mxu1 }
 0x37a   :  { %v432_v38 = vadd.f32 %v455_v34, %v431_v37 }
 0x37b   :  { %442 = vst.msk [vmem:[%s883_s7 + $0x8] sm:$0xff] %vm440_vm2, %v437_v36 }
 0x37c   :  { %441 = vst.msk [vmem:[%s883_s7] sm:$0xff] %vm440_vm2, %v432_v38 }
 0x37d   :  { %447 = vsyncpa [#allocation3], 1 }

</bundles_post_ra>
